<compile_context>
chip_gen: v7x
topology: tpu7x:2x2x1
jax: 0.10.0
libtpu: 0.0.40
codegen_flags: <defaults>
</compile_context>

<pallas_src>
import jax
import jax.numpy as jnp
import numpy as np
from jax.experimental import pallas as pl
from jax.experimental.pallas import tpu as pltpu

ZERO_COUNT_MOMENTUM = 0.1


def _drop_motifs_sparse_kernel(tc_ref, x_ref, y_ref, part_ref):
    """One (TB, C, TL) tile: threshold-sparsify + per-channel zero partial counts.

    tc_ref   : VMEM (C, 1)      per-channel effective threshold (+inf for dropped motifs)
    x_ref    : VMEM (TB, C, TL) input tile
    y_ref    : VMEM (TB, C, TL) output tile
    part_ref : VMEM (1, 1, C)   per-channel zero count for this tile (lane-dense)
    """
    x = x_ref[...]                                    # (TB, C, TL)
    tc = tc_ref[...][None, :, :]                      # (1, C, 1) -> broadcast over lanes
    y = jnp.where(x > tc, x, jnp.zeros_like(x))       # dropped motifs have tc = +inf
    y_ref[...] = y.astype(y_ref.dtype)
    # Count exact zeros (matches torch's (x == 0) even for negative thresholds).
    zeros = (y == 0).astype(jnp.float32)              # (TB, C, TL)
    counts = jnp.sum(zeros, axis=(0, 2))              # (C,)
    part_ref[...] = counts.reshape(part_ref.shape)    # lane-dense (1, 1, C) store


def _pick_tiles(N, C, L, itemsize, target_tile_bytes):
    """Choose (TB, TL): TL a multiple of 128 dividing L when possible (else full L),
    TB dividing N, with TB*C*TL*itemsize ~ target_tile_bytes (~1 MiB)."""
    if L % 128 == 0:
        lane_budget = max(128, target_tile_bytes // max(1, C * itemsize))
        cap = max(128, min(L, (lane_budget // 128) * 128))
        TL = 128
        for d in range(128, cap + 1, 128):
            if L % d == 0:
                TL = d
    else:
        TL = L  # full last dim is always a legal block extent
    row_bytes = C * TL * itemsize
    tb_cap = max(1, target_tile_bytes // row_bytes)
    TB = 1
    for t in range(1, min(N, tb_cap) + 1):
        if N % t == 0:
            TB = t
    return TB, TL


def spatially_sparse_drop_motifs_forward(x, keep_mask, zero_counts, threshold,
                                         momentum=ZERO_COUNT_MOMENTUM,
                                         target_tile_bytes=1 << 20):
    """x: (N, C, L). keep_mask: (C,) 1.0 kept / 0.0 dropped. zero_counts: (C,). threshold: scalar."""
    N, C, L = x.shape
    itemsize = jnp.dtype(x.dtype).itemsize
    TB, TL = _pick_tiles(N, C, L, itemsize, target_tile_bytes)
    GN, GL = N // TB, L // TL

    # Per-channel effective threshold: +inf for dropped motifs == "zero this channel".
    thr = jnp.asarray(threshold, dtype=x.dtype)
    tc = jnp.where(keep_mask.astype(bool), thr,
                   jnp.asarray(jnp.inf, dtype=x.dtype)).astype(x.dtype).reshape(C, 1)

    # VMEM budget: x + y double-buffered; clamp to stay safe on v7x (64 MiB physical).
    tile_bytes = TB * C * TL * itemsize
    vmem_limit = int(min(max(4 * tile_bytes + (2 << 20), 16 << 20), 32 << 20))

    y, partials = pl.pallas_call(
        _drop_motifs_sparse_kernel,
        out_shape=(
            jax.ShapeDtypeStruct((N, C, L), x.dtype),
            jax.ShapeDtypeStruct((GN * GL, 1, C), jnp.float32),
        ),
        grid=(GN, GL),
        in_specs=[
            pl.BlockSpec((C, 1), lambda i, j: (0, 0)),          # effective thresholds (resident)
            pl.BlockSpec((TB, C, TL), lambda i, j: (i, 0, j)),  # x tile
        ],
        out_specs=(
            pl.BlockSpec((TB, C, TL), lambda i, j: (i, 0, j)),          # y tile (lane-dense)
            pl.BlockSpec((1, 1, C), lambda i, j: (i * GL + j, 0, 0)),   # per-block partial counts
        ),
        compiler_params=pltpu.CompilerParams(
            dimension_semantics=("parallel", "parallel"),
            vmem_limit_bytes=vmem_limit,
        ),
    )(tc, x)

    # Tiny finalize in plain JAX: total zeros per channel -> mean -> momentum update.
    est = partials.sum(axis=(0, 1)) / jnp.float32(N * L)        # (C,)
    zc_new = zero_counts.astype(jnp.float32) * (1.0 - momentum) + momentum * est
    return y, zc_new


def _reference_forward(x, keep_mask, zero_counts, threshold, momentum=ZERO_COUNT_MOMENTUM):
    xd = x * keep_mask[None, :, None]
    y = jnp.where(xd > threshold, xd, 0.0)
    est = (y == 0).astype(jnp.float32).mean(axis=0).mean(axis=1)
    zc = zero_counts * (1.0 - momentum) + momentum * est
    return y, zc


if __name__ == "__main__":
    configs = [
        # (N, C, L, dropped, threshold, target_tile_bytes)
        (4, 8, 512, [1, 5], 0.3, 1 << 20),    # default tiling -> single block
        (4, 8, 512, [1, 5], 0.3, 8 * 1024),   # small target -> (4, 2) multi-block grid
        (2, 4, 96, [1], -0.25, 1 << 20),      # L % 128 != 0 path + negative threshold
    ]
    key = jax.random.PRNGKey(0)
    for (N, C, L, dropped, threshold, tgt) in configs:
        key, sub = jax.random.split(key)
        x = jax.random.normal(sub, (N, C, L), dtype=jnp.float32)
        keep_mask = jnp.ones((C,), jnp.float32).at[jnp.array(dropped)].set(0.0)
        zero_counts = jnp.zeros((C,), jnp.float32)

        y, zc_new = spatially_sparse_drop_motifs_forward(
            x, keep_mask, zero_counts, threshold, target_tile_bytes=tgt)
        y = jax.block_until_ready(y)
        zc_new = jax.block_until_ready(zc_new)

        y_ref, zc_ref = _reference_forward(x, keep_mask, zero_counts, threshold)
        np.testing.assert_allclose(np.asarray(y), np.asarray(y_ref), rtol=1e-6, atol=1e-6)
        np.testing.assert_allclose(np.asarray(zc_new), np.asarray(zc_ref), rtol=1e-6, atol=1e-6)

    print("KERNEL_OK")
</pallas_src>

<mosaic_0001>
module attributes {stable_mosaic.version = 11 : i64} {
  func.func @_drop_motifs_sparse_kernel(%arg0: i32, %arg1: i32, %arg2: memref<8x1xf32, #tpu.memory_space<vmem>>, %arg3: memref<4x8x512xf32, #tpu.memory_space<vmem>>, %arg4: memref<4x8x512xf32, #tpu.memory_space<vmem>>, %arg5: memref<1x1x8xf32, #tpu.memory_space<vmem>>) attributes {dimension_semantics = [#tpu.dimension_semantics<parallel>, #tpu.dimension_semantics<parallel>], iteration_bounds = array<i64: 1, 1>, scalar_prefetch = 0 : i64, scratch_operands = 0 : i64, tpu.core_type = #tpu.core_type<tc>, window_params = [{pipeline_mode = #tpu.pipeline_mode<synchronous>, transform_indices = @transform_0, window_bounds = array<i64: 8, 1>}, {transform_indices = @transform_1, window_bounds = array<i64: 4, 8, 512>}, {transform_indices = @transform_2, window_bounds = array<i64: 4, 8, 512>}, {transform_indices = @transform_3, window_bounds = array<i64: 1, 1, 8>}]} {
    %c0 = arith.constant 0 : index
    %c0_0 = arith.constant 0 : index
    %c0_1 = arith.constant 0 : index
    %0 = vector.load %arg3[%c0, %c0_0, %c0_1] : memref<4x8x512xf32, #tpu.memory_space<vmem>>, vector<4x8x512xf32>
    %c0_2 = arith.constant 0 : index
    %c0_3 = arith.constant 0 : index
    %1 = vector.load %arg2[%c0_2, %c0_3] : memref<8x1xf32, #tpu.memory_space<vmem>>, vector<8x1xf32>
    %2 = vector.shape_cast %1 : vector<8x1xf32> to vector<1x8x1xf32>
    %3 = vector.broadcast %2 : vector<1x8x1xf32> to vector<4x8x512xf32>
    %4 = arith.cmpf ogt, %0, %3 : vector<4x8x512xf32>
    %cst = arith.constant 0.000000e+00 : f32
    %5 = vector.broadcast %cst : f32 to vector<4x8x512xf32>
    %6 = arith.select %4, %0, %5 : vector<4x8x512xi1>, vector<4x8x512xf32>
    %c0_4 = arith.constant 0 : index
    %c0_5 = arith.constant 0 : index
    %c0_6 = arith.constant 0 : index
    %7 = vector.load %arg4[%c0_4, %c0_5, %c0_6] : memref<4x8x512xf32, #tpu.memory_space<vmem>>, vector<4x8x512xf32>
    tpu.vector_store %arg4[%c0_4, %c0_5, %c0_6], %6 {strides = array<i32>} : memref<4x8x512xf32, #tpu.memory_space<vmem>>, vector<4x8x512xf32>,
    %cst_7 = arith.constant 0.000000e+00 : f32
    %8 = vector.broadcast %cst_7 : f32 to vector<4x8x512xf32>
    %9 = arith.cmpf oeq, %6, %8 : vector<4x8x512xf32>
    %10 = arith.extui %9 : vector<4x8x512xi1> to vector<4x8x512xi32>
    %11 = arith.sitofp %10 : vector<4x8x512xi32> to vector<4x8x512xf32>
    %cst_8 = arith.constant dense<0.000000e+00> : vector<8xf32>
    %12 = vector.multi_reduction <add>, %11, %cst_8 [0, 2] : vector<4x8x512xf32> to vector<8xf32>
    %13 = vector.shape_cast %12 : vector<8xf32> to vector<1x1x8xf32>
    %c0_9 = arith.constant 0 : index
    %c0_10 = arith.constant 0 : index
    %c0_11 = arith.constant 0 : index
    %14 = vector.load %arg5[%c0_9, %c0_10, %c0_11] : memref<1x1x8xf32, #tpu.memory_space<vmem>>, vector<1x1x8xf32>
    tpu.vector_store %arg5[%c0_9, %c0_10, %c0_11], %13 {strides = array<i32>} : memref<1x1x8xf32, #tpu.memory_space<vmem>>, vector<1x1x8xf32>,
    return
  }
  func.func @transform_0(%arg0: i32, %arg1: i32) -> (i32, i32) {
    %c0_i32 = arith.constant 0 : i32
    %c0_i32_0 = arith.constant 0 : i32
    %c0_i32_1 = arith.constant 0 : i32
    return %c0_i32, %c0_i32_0 : i32, i32
  }
  func.func @transform_1(%arg0: i32, %arg1: i32) -> (i32, i32, i32) {
    %c0_i32 = arith.constant 0 : i32
    %c0_i32_0 = arith.constant 0 : i32
    return %arg0, %c0_i32, %arg1 : i32, i32, i32
  }
  func.func @transform_2(%arg0: i32, %arg1: i32) -> (i32, i32, i32) {
    %c0_i32 = arith.constant 0 : i32
    %c0_i32_0 = arith.constant 0 : i32
    return %arg0, %c0_i32, %arg1 : i32, i32, i32
  }
  func.func @transform_3(%arg0: i32, %arg1: i32) -> (i32, i32, i32) {
    %c1_i32 = arith.constant 1 : i32
    %0 = arith.muli %arg0, %c1_i32 : i32
    %1 = arith.addi %0, %arg1 : i32
    %c0_i32 = arith.constant 0 : i32
    %c0_i32_0 = arith.constant 0 : i32
    %c0_i32_1 = arith.constant 0 : i32
    return %1, %c0_i32, %c0_i32_0 : i32, i32, i32
  }
}

</mosaic_0001>

<bundles_post_ra>
// kernel: tpu_custom_call.1
= control target key start
LH: loop header
LB: loop body
LE: loop exit
PB: predicated region body
PF: predicated region fallthrough
CT: control target
= control target key end

     0   :  { %9 = vsyncpa [#allocation3], 0  ;;  %s393_s0 = inlined_call_operand.vmem [shape: f32[8,1], index: 0, kind: input, shape index: {}]   ;;  %s394_s1 = inlined_call_operand.hbm [shape: f32[4,8,512], index: 1, kind: input, shape index: {}]   ;;  %s395_s2 = inlined_call_operand.hbm [shape: f32[4,8,512], index: 2, kind: output, shape index: {0}]   ;;  %s396_s3 = inlined_call_operand.hbm [shape: f32[1,1,8], index: 3, kind: output, shape index: {1}]  }
   0x1   :  { %10 = vsyncpa [#allocation4], 0 }
   0x2   :  { %11 = vsyncpa [#allocation7], 0  ;;  %s305_s12 = smov [#allocation2]   ;;  %s233_s16 = scalar_lea.hbm %s394_s1, 2048 }
   0x3   :  { %s19_s13 = sshll.u32 %s305_s12, 4  ;;  %p234_p0 = scmp.ne.s32.totalorder %s394_s1, %s233_s16  ;;  %s20_s13 = int_to_ptr.vmem [resolvable:$true] %s19_s13 }
   0x4   :  { %p237_p1 = scmp.lt.u32.totalorder %s233_s16, %s394_s1 }
   0x6   :  { %p239_p2 = pnand %p237_p1, %p234_p0 }
   0x8   :  { %242 = shalt.err (!%p239_p2)
}
   0x9   :  { %s243_s21 = scalar_lea.vmem %s20_s13, 2048  ;;  %p248_p4 = scmp.lt.s32.totalorder %s20_s13, %s20_s13 }
   0xa   :  { %p244_p3 = scmp.ne.s32.totalorder %s20_s13, %s243_s21  ;;  %p249_p5 = scmp.lt.s32.totalorder %s243_s21, %s243_s21 }
   0xc   :  { %p250_p6 = por %p249_p5, %p248_p4 }
   0xe   :  { %p251_p7 = pnand %p250_p6, %p244_p3 }
  0x10   :  { %254 = shalt.err (!%p251_p7)
}
  0x11   :  { %s306_s22 = smov 512   ;;  %s307_s23 = smov 32  }
  0x12   :  { %25 = dma.hbm_to_vmem [thread:$0]  %s394_s1, 2048, %s20_s13, [#allocation3], %s306_s22, %s306_s22, %s307_s23  }
  0x13   :  { %299 = dma.done.wait [#allocation3], 2048  }
  0x14   :  { %300 = vsyncadd [#allocation3], 4294965248  ;;  %v308_v0 = vmov 0   ;;  %v46_v1 = vld [vmem:[%s393_s0] sm:$0xff]  ;;  %v31_v3 = vld [vmem:[#allocation2 + $0x8] sm:$0xff]  ;;  %v309_v35 = vmov 0.0  }
  0x15   :  { %232 = vset.pattern.permute.xlu0 %v308_v0  ;;  %v30_v2 = vld [vmem:[#allocation2] sm:$0xff]  ;;  %v32_v4 = vld [vmem:[#allocation2 + $0x10] sm:$0xff]  ;;  %v33_v5 = vld [vmem:[#allocation2 + $0x18] sm:$0xff]  ;;  %s310_s0 = smov [#allocation5]  }
  0x16   :  { %49 = vperm.xlu0 %232, %v46_v1   ;;  %v34_v6 = vld [vmem:[#allocation2 + $0x20] sm:$0xff]  ;;  %v35_v7 = vld [vmem:[#allocation2 + $0x28] sm:$0xff]  ;;  %v36_v8 = vld [vmem:[#allocation2 + $0x30] sm:$0xff]  ;;  %s180_s1 = sshll.u32 %s310_s0, 4  ;;  %s181_s1 = int_to_ptr.vmem [resolvable:$true] %s180_s1 }
  0x17   :  { %v37_v9 = vld [vmem:[#allocation2 + $0x38] sm:$0xff]  ;;  %v38_v10 = vld [vmem:[#allocation2 + $0x40] sm:$0xff]  ;;  %v39_v11 = vld [vmem:[#allocation2 + $0x48] sm:$0xff]  ;;  %s255_s28 = scalar_lea.vmem %s181_s1, 2048  ;;  %p260_p9 = scmp.lt.s32.totalorder %s181_s1, %s181_s1 }
  0x18   :  { %v40_v13 = vld [vmem:[#allocation2 + $0x50] sm:$0xff]  ;;  %v41_v14 = vld [vmem:[#allocation2 + $0x58] sm:$0xff]  ;;  %v42_v15 = vld [vmem:[#allocation2 + $0x60] sm:$0xff]  ;;  %p256_p8 = scmp.ne.s32.totalorder %s181_s1, %s255_s28  ;;  %p261_p10 = scmp.lt.s32.totalorder %s255_s28, %s255_s28 }
  0x19   :  { %v43_v16 = vld [vmem:[#allocation2 + $0x68] sm:$0xff]  ;;  %v44_v17 = vld [vmem:[#allocation2 + $0x70] sm:$0xff]  ;;  %v45_v18 = vld [vmem:[#allocation2 + $0x78] sm:$0xff] }
  0x1a   :  { %p262_p11 = por %p261_p10, %p260_p9 }
  0x1c   :  { %p263_p12 = pnand %p262_p11, %p256_p8 }
  0x95   :  { %v50_v12 = vpop.permute.xlu0 %49 }
  0x96   :  { %vm52_vm0 = vcmp.gt.f32.partialorder %v30_v2, %v50_v12  ;;  %vm53_vm1 = vcmp.gt.f32.partialorder %v31_v3, %v50_v12  ;;  %vm54_vm2 = vcmp.gt.f32.partialorder %v32_v4, %v50_v12  ;;  %vm55_vm3 = vcmp.gt.f32.partialorder %v33_v5, %v50_v12 }
  0x97   :  { %vm56_vm4 = vcmp.gt.f32.partialorder %v34_v6, %v50_v12  ;;  %vm57_vm5 = vcmp.gt.f32.partialorder %v35_v7, %v50_v12  ;;  %vm58_vm6 = vcmp.gt.f32.partialorder %v36_v8, %v50_v12  ;;  %vm59_vm7 = vcmp.gt.f32.partialorder %v37_v9, %v50_v12 }
  0x98   :  { %vm60_vm8 = vcmp.gt.f32.partialorder %v38_v10, %v50_v12  ;;  %vm61_vm9 = vcmp.gt.f32.partialorder %v39_v11, %v50_v12  ;;  %vm62_vm10 = vcmp.gt.f32.partialorder %v40_v13, %v50_v12  ;;  %vm63_vm11 = vcmp.gt.f32.partialorder %v41_v14, %v50_v12 }
  0x99   :  { %vm64_vm12 = vcmp.gt.f32.partialorder %v42_v15, %v50_v12  ;;  %vm65_vm13 = vcmp.gt.f32.partialorder %v43_v16, %v50_v12  ;;  %vm66_vm14 = vcmp.gt.f32.partialorder %v44_v17, %v50_v12  ;;  %vm67_vm15 = vcmp.gt.f32.partialorder %v45_v18, %v50_v12 }
  0x9a   :  { %v68_v19 = vsel %vm52_vm0, %v30_v2, 0.0  ;;  %v69_v20 = vsel %vm53_vm1, %v31_v3, 0.0  ;;  %v70_v21 = vsel %vm54_vm2, %v32_v4, 0.0  ;;  %v71_v22 = vsel %vm55_vm3, %v33_v5, 0.0 }
  0x9b   :  { %v72_v23 = vsel %vm56_vm4, %v34_v6, 0.0  ;;  %v73_v24 = vsel %vm57_vm5, %v35_v7, 0.0  ;;  %v74_v25 = vsel %vm58_vm6, %v36_v8, 0.0  ;;  %v75_v26 = vsel %vm59_vm7, %v37_v9, 0.0  ;;  %85 = vst [vmem:[#allocation5 + $0x8] sm:$0xff] %v69_v20  ;;  %86 = vst [vmem:[#allocation5 + $0x10] sm:$0xff] %v70_v21 }
  0x9c   :  { %87 = vst [vmem:[#allocation5 + $0x18] sm:$0xff] %v71_v22  ;;  %84 = vst [vmem:[#allocation5] sm:$0xff] %v68_v19  ;;  %v76_v27 = vsel %vm60_vm8, %v38_v10, 0.0  ;;  %v77_v28 = vsel %vm61_vm9, %v39_v11, 0.0  ;;  %v78_v29 = vsel %vm62_vm10, %v40_v13, 0.0  ;;  %v79_v30 = vsel %vm63_vm11, %v41_v14, 0.0 }
  0x9d   :  { %88 = vst [vmem:[#allocation5 + $0x20] sm:$0xff] %v72_v23  ;;  %89 = vst [vmem:[#allocation5 + $0x28] sm:$0xff] %v73_v24  ;;  %v80_v31 = vsel %vm64_vm12, %v42_v15, 0.0  ;;  %v81_v32 = vsel %vm65_vm13, %v43_v16, 0.0  ;;  %v82_v33 = vsel %vm66_vm14, %v44_v17, 0.0  ;;  %v83_v34 = vsel %vm67_vm15, %v45_v18, 0.0 }
  0x9e   :  { %90 = vst [vmem:[#allocation5 + $0x30] sm:$0xff] %v74_v25  ;;  %91 = vst [vmem:[#allocation5 + $0x38] sm:$0xff] %v75_v26  ;;  %vm100_vm0 = vcmp.eq.f32.partialorder %v68_v19, 0.0  ;;  %vm101_vm1 = vcmp.eq.f32.partialorder %v69_v20, 0.0  ;;  %vm102_vm2 = vcmp.eq.f32.partialorder %v70_v21, 0.0  ;;  %vm103_vm3 = vcmp.eq.f32.partialorder %v71_v22, 0.0 }
  0x9f   :  { %92 = vst [vmem:[#allocation5 + $0x40] sm:$0xff] %v76_v27  ;;  %93 = vst [vmem:[#allocation5 + $0x48] sm:$0xff] %v77_v28  ;;  %v209_v36 = vsel %vm100_vm0, 1.0, %v309_v35  ;;  %v210_v37 = vsel %vm101_vm1, 1.0, %v309_v35  ;;  %v211_v39 = vsel %vm102_vm2, 1.0, %v309_v35  ;;  %vm104_vm4 = vcmp.eq.f32.partialorder %v72_v23, 0.0 }
  0xa0   :  { %94 = vst [vmem:[#allocation5 + $0x50] sm:$0xff] %v78_v29  ;;  %95 = vst [vmem:[#allocation5 + $0x58] sm:$0xff] %v79_v30  ;;  %v148_v38 = vadd.f32 %v210_v37, %v209_v36  ;;  %v212_v41 = vsel %vm103_vm3, 1.0, %v309_v35  ;;  %vm105_vm5 = vcmp.eq.f32.partialorder %v73_v24, 0.0  ;;  %v213_v43 = vsel %vm104_vm4, 1.0, %v309_v35 }
  0xa1   :  { %96 = vst [vmem:[#allocation5 + $0x60] sm:$0xff] %v80_v31  ;;  %97 = vst [vmem:[#allocation5 + $0x68] sm:$0xff] %v81_v32  ;;  %vm106_vm6 = vcmp.eq.f32.partialorder %v74_v25, 0.0  ;;  %v214_v45 = vsel %vm105_vm5, 1.0, %v309_v35  ;;  %vm107_vm7 = vcmp.eq.f32.partialorder %v75_v26, 0.0  ;;  %vm108_vm8 = vcmp.eq.f32.partialorder %v76_v27, 0.0 }
  0xa2   :  { %98 = vst [vmem:[#allocation5 + $0x70] sm:$0xff] %v82_v33  ;;  %99 = vst [vmem:[#allocation5 + $0x78] sm:$0xff] %v83_v34  ;;  %v149_v40 = vadd.f32 %v211_v39, %v148_v38  ;;  %v215_v47 = vsel %vm106_vm6, 1.0, %v309_v35  ;;  %v216_v49 = vsel %vm107_vm7, 1.0, %v309_v35  ;;  %vm109_vm9 = vcmp.eq.f32.partialorder %v77_v28, 0.0 }
  0xa3   :  { %v217_v51 = vsel %vm108_vm8, 1.0, %v309_v35  ;;  %vm110_vm10 = vcmp.eq.f32.partialorder %v78_v29, 0.0  ;;  %v218_v53 = vsel %vm109_vm9, 1.0, %v309_v35  ;;  %vm111_vm11 = vcmp.eq.f32.partialorder %v79_v30, 0.0 }
  0xa4   :  { %v150_v42 = vadd.f32 %v212_v41, %v149_v40  ;;  %v219_v55 = vsel %vm110_vm10, 1.0, %v309_v35  ;;  %vm112_vm12 = vcmp.eq.f32.partialorder %v80_v31, 0.0  ;;  %v220_v57 = vsel %vm111_vm11, 1.0, %v309_v35 }
  0xa5   :  { %vm113_vm13 = vcmp.eq.f32.partialorder %v81_v32, 0.0  ;;  %v221_v59 = vsel %vm112_vm12, 1.0, %v309_v35  ;;  %vm114_vm14 = vcmp.eq.f32.partialorder %v82_v33, 0.0  ;;  %vm115_vm15 = vcmp.eq.f32.partialorder %v83_v34, 0.0 }
  0xa6   :  { %v151_v44 = vadd.f32 %v213_v43, %v150_v42  ;;  %v222_v61 = vsel %vm113_vm13, 1.0, %v309_v35  ;;  %v223_v63 = vsel %vm114_vm14, 1.0, %v309_v35  ;;  %v224_v1 = vsel %vm115_vm15, 1.0, %v309_v35 }
  0xa8   :  { %v152_v46 = vadd.f32 %v214_v45, %v151_v44 }
  0xaa   :  { %v153_v48 = vadd.f32 %v215_v47, %v152_v46 }
  0xac   :  { %v154_v50 = vadd.f32 %v216_v49, %v153_v48 }
  0xae   :  { %v155_v52 = vadd.f32 %v217_v51, %v154_v50 }
  0xb0   :  { %v156_v54 = vadd.f32 %v218_v53, %v155_v52 }
  0xb2   :  { %v157_v56 = vadd.f32 %v219_v55, %v156_v54 }
  0xb4   :  { %v158_v58 = vadd.f32 %v220_v57, %v157_v56 }
  0xb6   :  { %v159_v60 = vadd.f32 %v221_v59, %v158_v58 }
  0xb8   :  { %v160_v62 = vadd.f32 %v222_v61, %v159_v60 }
  0xba   :  { %v161_v0 = vadd.f32 %v223_v63, %v160_v62 }
  0xbc   :  { %v162_v2 = vadd.f32 %v224_v1, %v161_v0 }
  0xbe   :  { %163 = vadd.xlane.f32.xlu0 %v162_v2 }
  0xbf   :  { %266 = shalt.err (!%p263_p12)
}
  0xc0   :  { %s267_s4 = scalar_lea.hbm %s395_s2, 2048 }
  0xc1   :  { %p268_p13 = scmp.ne.s32.totalorder %s395_s2, %s267_s4  ;;  %p271_p0 = scmp.lt.u32.totalorder %s267_s4, %s395_s2 }
  0xc3   :  { %p273_p1 = pnand %p271_p0, %p268_p13 }
  0xc5   :  { %276 = shalt.err (!%p273_p1)
}
  0xc6   :  { %186 = dma.vmem_to_hbm [thread:$0]  %s181_s1, 2048, %s395_s2, [#allocation4], %s306_s22, %s306_s22, %s307_s23   ;;  %v166_v3 = vlaneseq  ;;  %vm173_vm0 = vcmask 57344  }
  0xc7   :  { %s311_s11 = smov [#allocation6]  }
  0xc8   :  { %v167_v4 = vand.u32 127, %v166_v3  ;;  %v169_v5 = vshrl.u32 %v166_v3, 7  ;;  %s196_s12 = sshll.u32 %s311_s11, 4  ;;  %s197_s12 = int_to_ptr.vmem [resolvable:$true] %s196_s12 }
  0xc9   :  { %s277_s13 = scalar_lea.vmem %s197_s12, 16  ;;  %s281_s14 = scalar_lea.vmem %s197_s12, 32 }
  0xca   :  { %v170_v6 = vsub.s32 %v167_v4, %v169_v5  ;;  %p278_p2 = scmp.ne.s32.totalorder %s197_s12, %s277_s13  ;;  %p282_p3 = scmp.lt.s32.totalorder %s197_s12, %s197_s12 }
  0xcb   :  { %p283_p4 = scmp.lt.s32.totalorder %s281_s14, %s277_s13 }
  0xcd   :  { %p284_p5 = por %p283_p4, %p282_p3 }
  0xcf   :  { %p285_p6 = pnand %p284_p5, %p278_p2 }
 0x14b   :  { %v164_v7 = vpop.xlane.xlu0 %163 }
 0x14c   :  { %v171_v8 = vrot.slane %v164_v7, %v170_v6 }
 0x14e   :  { %174 = vst.msk [vmem:[#allocation6] sm:$0x1] %vm173_vm0, %v171_v8 }
 0x14f   :  { %288 = shalt.err (!%p285_p6)
}
 0x150   :  { %s289_s16 = scalar_lea.hbm %s396_s3, 16 }
 0x151   :  { %p290_p7 = scmp.ne.s32.totalorder %s396_s3, %s289_s16  ;;  %p293_p8 = scmp.lt.u32.totalorder %s289_s16, %s396_s3 }
 0x153   :  { %p295_p9 = pnand %p293_p8, %p290_p7 }
 0x155   :  { %298 = shalt.err (!%p295_p9)
}
 0x156   :  { %199 = dma.vmem_to_hbm [thread:$0]  %s197_s12, 16, %s396_s3, [#allocation7]  }
 0x157   :  { %301 = dma.done.wait [#allocation4], 2048  }
 0x158   :  { %302 = vsyncadd [#allocation4], 4294965248 }
 0x159   :  { %303 = dma.done.wait [#allocation7], 16  }
 0x15a   :  { %304 = vsyncadd [#allocation7], 4294967280 }
 0x15b   :  { %206 = vsyncpa [#allocation3], 1 }
 0x15c   :  { %207 = vsyncpa [#allocation4], 1 }
 0x15d   :  { %208 = vsyncpa [#allocation7], 1 }

</bundles_post_ra>
